<compile_context>
chip_gen: v6e
topology: v6e:2x2x1
jax: 0.10.0
libtpu: 0.0.40
codegen_flags: <defaults>
</compile_context>

<pallas_src>
import math

import jax
import jax.numpy as jnp
from jax import lax
from jax.experimental import pallas as pl
from jax.experimental.pallas import tpu as pltpu

PAC = 2  # corresponds to configure.PAC in the reference module

_TARGET_X_BLOCK_BYTES = 2 << 20   # ~2 MiB of x per grid step
_VMEM_WORKSET_BUDGET = 16 << 20   # per-step working-set cap (v7x / v5e safe)


def _round_up(x, m):
    return ((x + m - 1) // m) * m


def _cdiv(a, b):
    return -(-a // b)


def _discriminator_kernel(*refs):
    """refs = (x_ref, w1, b1, ..., wH, bH, w_last_row, b_last, out_ref).

    x_ref:       (TILE_B, packdim) block of the packed batch (f32 or bf16)
    wi:          (in, out_pad) bf16 hidden weights (VMEM-resident)
    bi:          (1, out_pad)  f32 hidden biases   (VMEM-resident)
    w_last_row:  (1, K_pad) bf16 final-layer weight, row layout
    b_last:      (1, 1) f32 final-layer bias
    out_ref:     (1, TILE_B) f32 lane-dense output block
    """
    x_ref = refs[0]
    out_ref = refs[-1]
    w_last_ref = refs[-3]
    b_last_ref = refs[-2]
    hidden_refs = refs[1:-3]
    n_hidden = len(hidden_refs) // 2

    h = x_ref[...]                                           # (TILE_B, packdim)
    for i in range(n_hidden):
        w = hidden_refs[2 * i][...]                          # (in, out_pad) bf16
        b = hidden_refs[2 * i + 1][...]                      # (1, out_pad)  f32
        acc = jnp.dot(h.astype(jnp.bfloat16), w,
                      preferred_element_type=jnp.float32)    # MXU, f32 accum
        t = acc + b                                          # f32 VPU epilogue
        h = jnp.where(t > 0, t, 0.2 * t)                     # LeakyReLU(0.2)
        # TODO(synk): Dropout(0.5) is identity here (inference semantics); a
        # training-mode forward would mask with pltpu.prng_random_bits + 2x scale.

    # Final Linear(dim, 1) as a lane-dense row: contract K of (1, K_pad) with K of
    # (TILE_B, K_pad) -> (1, TILE_B). Avoids (TILE_B, 1) masked 1-lane stores.
    y = lax.dot_general(
        w_last_ref[...], h.astype(jnp.bfloat16),
        dimension_numbers=(((1,), (1,)), ((), ())),
        preferred_element_type=jnp.float32)                  # (1, TILE_B)
    out_ref[...] = (y + b_last_ref[...]).astype(out_ref.dtype)


def init_discriminator_params(key, input_dim, dis_dims, pack=PAC):
    """torch.nn.Linear-style init (uniform +-1/sqrt(fan_in)).

    Returns [(W, b), ...] with W: (in_features, out_features), b: (1, out)."""
    dim = input_dim * pack
    out_dims = list(dis_dims) + [1]
    params = []
    for out_d in out_dims:
        key, kw, kb = jax.random.split(key, 3)
        bound = 1.0 / math.sqrt(dim)
        w = jax.random.uniform(kw, (dim, out_d), jnp.float32, -bound, bound)
        b = jax.random.uniform(kb, (1, out_d), jnp.float32, -bound, bound)
        params.append((w, b))
        dim = out_d
    return params


def _prepare_params(params):
    """Cast to MXU dtypes and zero-pad hidden widths to multiples of 128 so
    activations are lane-dense. Padded columns have zero weights/biases and the
    following layer's padded rows are zero, so results are unchanged."""
    hidden, (w_last, b_last) = params[:-1], params[-1]
    prepped = []
    prev_pad = 0
    for w, b in hidden:
        _, out_d = w.shape
        out_pad = _round_up(max(out_d, 128), 128) - out_d
        wp = jnp.pad(jnp.asarray(w, jnp.float32), ((0, prev_pad), (0, out_pad)))
        bp_ = jnp.pad(jnp.asarray(b, jnp.float32).reshape(1, -1),
                      ((0, 0), (0, out_pad)))
        prepped.append((wp.astype(jnp.bfloat16), bp_))
        prev_pad = out_pad
    wl = jnp.pad(jnp.asarray(w_last, jnp.float32), ((0, prev_pad), (0, 0)))
    w_last_row = wl.reshape(1, -1).astype(jnp.bfloat16)      # (1, K_pad)
    b_last_sc = jnp.asarray(b_last, jnp.float32).reshape(1, 1)
    return prepped, w_last_row, b_last_sc


def _choose_tile_b(bp, packdim, x_itemsize, max_width, tile_b=None):
    """Pick the packed-batch tile: big enough to amortize per-step overhead,
    small enough for the VMEM budget, and >= 2 (even) grid steps for v7x."""
    if bp < 256:
        # Too small for two 128-row blocks: single block equal to the full dims
        # (no (8,128) alignment needed, no padding).
        return bp
    row_x_bytes = packdim * x_itemsize
    tb = _round_up(_cdiv(_TARGET_X_BLOCK_BYTES, row_x_bytes), 128)
    # Per-step working set: double-buffered x + ~4 live f32 copies of the widest
    # activation per row (conservative).
    per_row_bytes = 2 * row_x_bytes + 4 * max_width * 4
    tb_cap = max(128, (_VMEM_WORKSET_BUDGET // per_row_bytes) // 128 * 128)
    tb = min(tb, tb_cap)
    if tile_b is not None:
        tb = min(tb, max(128, _round_up(int(tile_b), 128)))
    # At least two grid steps so v7x's second TensorCore is not idle.
    tb = min(tb, _round_up(_cdiv(bp, 2), 128))
    # Prefer an even number of grid steps (balanced 2-core split).
    n = _cdiv(bp, tb)
    if n > 1 and n % 2 == 1:
        tb2 = _round_up(_cdiv(bp, n + 1), 128)
        if tb2 >= 128 and _cdiv(bp, tb2) % 2 == 0:
            tb = tb2
    return tb


def discriminator_forward(x, params, pack=PAC, tile_b=None):
    """Pallas equivalent of Discriminator.forward.

    x: (B, input_dim) float32 (or bfloat16), with B % pack == 0.
    Returns: (B // pack, 1) float32.
    """
    B, input_dim = x.shape
    assert B % pack == 0, "batch must be divisible by pack"
    packdim = input_dim * pack
    x_packed = x.reshape(-1, packdim)          # same as torch .view(-1, packdim)
    bp = x_packed.shape[0]

    hidden, w_last_row, b_last_sc = _prepare_params(params)
    max_width = max([packdim] + [int(w.shape[1]) for w, _ in hidden]
                    + [int(w_last_row.shape[1])])

    x_itemsize = x_packed.dtype.itemsize
    tb = _choose_tile_b(bp, packdim, x_itemsize, max_width, tile_b)
    # Ragged last block (if any) is handled by Pallas: OOB reads produce garbage
    # rows whose outputs land out of bounds and are discarded. No jnp.pad copy.
    n_blocks = _cdiv(bp, tb)

    # Streamed input block + resident weights/biases (constant index_maps).
    flat_args = [x_packed]
    in_specs = [pl.BlockSpec((tb, packdim), lambda i: (i, 0))]
    for w, b in hidden:
        flat_args += [w, b]
        # TODO(synk): pipeline_mode=pl.Buffered(1) would drop the dead second
        # buffer of these constant-index specs; only matters for wide dis_dims.
        in_specs += [pl.BlockSpec(w.shape, lambda i: (0, 0)),
                     pl.BlockSpec(b.shape, lambda i: (0, 0))]
    flat_args += [w_last_row, b_last_sc]
    in_specs += [pl.BlockSpec(w_last_row.shape, lambda i: (0, 0)),
                 pl.BlockSpec((1, 1), lambda i: (0, 0))]

    # Explicit VMEM budget: double-buffered x + (1, tb) out + resident weights
    # (2 buffers each) + headroom for in-kernel activation temporaries.
    weight_bytes = sum(int(a.size) * a.dtype.itemsize for a in flat_args[1:])
    est = (2 * tb * packdim * x_itemsize
           + 2 * tb * 4
           + 2 * weight_bytes
           + 4 * tb * max_width * 4)
    vmem_limit = int(min(32 << 20, max(8 << 20, 2 * est)))

    flops = 2 * bp * (sum(int(w.size) for w, _ in hidden) + int(w_last_row.size))
    bytes_accessed = int(x_packed.size) * x_itemsize + bp * 4 + weight_bytes

    out = pl.pallas_call(
        _discriminator_kernel,
        grid=(n_blocks,),
        in_specs=in_specs,
        out_specs=pl.BlockSpec((1, tb), lambda i: (0, i)),
        out_shape=jax.ShapeDtypeStruct((1, bp), jnp.float32),
        compiler_params=pltpu.CompilerParams(
            dimension_semantics=("parallel",),
            vmem_limit_bytes=vmem_limit),
        cost_estimate=pl.CostEstimate(
            flops=int(flops), transcendentals=0,
            bytes_accessed=int(bytes_accessed)),
    )(*flat_args)

    return out.reshape(bp, 1)


def _reference_forward(x, params, pack=PAC):
    """Plain-JAX f32 reference for correctness checking."""
    B, input_dim = x.shape
    h = x.reshape(-1, input_dim * pack).astype(jnp.float32)
    n = len(params)
    for i, (w, b) in enumerate(params):
        h = h @ w + b
        if i < n - 1:
            h = jnp.where(h > 0, h, 0.2 * h)
    return h


if __name__ == "__main__":
    key = jax.random.PRNGKey(0)
    k_param, k_x1, k_x2 = jax.random.split(key, 3)

    input_dim = 16
    dis_dims = (32, 32)
    pack = PAC

    params = init_discriminator_params(k_param, input_dim, dis_dims, pack=pack)

    # Small shape (single grid step, block == full array dims).
    x_small = jax.random.normal(k_x1, (8, input_dim), dtype=jnp.float32)
    out_small = jax.block_until_ready(
        discriminator_forward(x_small, params, pack=pack))
    ref_small = _reference_forward(x_small, params, pack=pack)
    assert out_small.shape == (8 // pack, 1), out_small.shape
    # bf16 matmul operands (f32 accumulate) -> loosened tolerance vs f32 reference.
    assert jnp.allclose(out_small, ref_small, atol=5e-2, rtol=5e-2)

    # Larger, non-tile-multiple batch: exercises multi-block grid (2 even blocks
    # for v7x) with a ragged last block and no padding copy.
    x_big = jax.random.normal(k_x2, (3000, input_dim), dtype=jnp.float32)
    out_big = jax.block_until_ready(
        discriminator_forward(x_big, params, pack=pack))
    ref_big = _reference_forward(x_big, params, pack=pack)
    assert out_big.shape == (3000 // pack, 1), out_big.shape
    assert jnp.allclose(out_big, ref_big, atol=5e-2, rtol=5e-2)

    print("KERNEL_OK")
</pallas_src>

<mosaic_0001>
module attributes {stable_mosaic.version = 11 : i64} {
  func.func @_discriminator_kernel(%arg0: i32, %arg1: memref<4x32xf32, #tpu.memory_space<vmem>>, %arg2: memref<32x128xbf16, #tpu.memory_space<vmem>>, %arg3: memref<1x128xf32, #tpu.memory_space<vmem>>, %arg4: memref<128x128xbf16, #tpu.memory_space<vmem>>, %arg5: memref<1x128xf32, #tpu.memory_space<vmem>>, %arg6: memref<1x128xbf16, #tpu.memory_space<vmem>>, %arg7: memref<1x1xf32, #tpu.memory_space<vmem>>, %arg8: memref<1x4xf32, #tpu.memory_space<vmem>>) attributes {dimension_semantics = [#tpu.dimension_semantics<parallel>], iteration_bounds = array<i64: 1>, scalar_prefetch = 0 : i64, scratch_operands = 0 : i64, tpu.core_type = #tpu.core_type<tc>, window_params = [{transform_indices = @transform_0, window_bounds = array<i64: 4, 32>}, {pipeline_mode = #tpu.pipeline_mode<synchronous>, transform_indices = @transform_1, window_bounds = array<i64: 32, 128>}, {pipeline_mode = #tpu.pipeline_mode<synchronous>, transform_indices = @transform_2, window_bounds = array<i64: 1, 128>}, {pipeline_mode = #tpu.pipeline_mode<synchronous>, transform_indices = @transform_3, window_bounds = array<i64: 128, 128>}, {pipeline_mode = #tpu.pipeline_mode<synchronous>, transform_indices = @transform_4, window_bounds = array<i64: 1, 128>}, {pipeline_mode = #tpu.pipeline_mode<synchronous>, transform_indices = @transform_5, window_bounds = array<i64: 1, 128>}, {pipeline_mode = #tpu.pipeline_mode<synchronous>, transform_indices = @transform_6, window_bounds = array<i64: 1, 1>}, {transform_indices = @transform_7, window_bounds = array<i64: 1, 4>}]} {
    %c0 = arith.constant 0 : index
    %c0_0 = arith.constant 0 : index
    %0 = vector.load %arg1[%c0, %c0_0] : memref<4x32xf32, #tpu.memory_space<vmem>>, vector<4x32xf32>
    %c0_1 = arith.constant 0 : index
    %c0_2 = arith.constant 0 : index
    %1 = vector.load %arg2[%c0_1, %c0_2] : memref<32x128xbf16, #tpu.memory_space<vmem>>, vector<32x128xbf16>
    %c0_3 = arith.constant 0 : index
    %c0_4 = arith.constant 0 : index
    %2 = vector.load %arg3[%c0_3, %c0_4] : memref<1x128xf32, #tpu.memory_space<vmem>>, vector<1x128xf32>
    %3 = arith.truncf %0 : vector<4x32xf32> to vector<4x32xbf16>
    %cst = arith.constant dense<0.000000e+00> : vector<4x128xf32>
    %4 = tpu.matmul %3, %1, %cst {dimension_numbers = #tpu.dot_dimension_numbers<[1], [0], [0], [1], [0, 0, 1, 1], [], []>} : vector<4x32xbf16>, vector<32x128xbf16>, vector<4x128xf32> -> vector<4x128xf32>
    %5 = vector.broadcast %2 : vector<1x128xf32> to vector<4x128xf32>
    %6 = arith.addf %4, %5 : vector<4x128xf32>
    %cst_5 = arith.constant 0.000000e+00 : f32
    %7 = vector.broadcast %cst_5 : f32 to vector<4x128xf32>
    %8 = arith.cmpf ogt, %6, %7 : vector<4x128xf32>
    %cst_6 = arith.constant 2.000000e-01 : f32
    %9 = vector.broadcast %cst_6 : f32 to vector<4x128xf32>
    %10 = arith.mulf %9, %6 : vector<4x128xf32>
    %11 = arith.select %8, %6, %10 : vector<4x128xi1>, vector<4x128xf32>
    %c0_7 = arith.constant 0 : index
    %c0_8 = arith.constant 0 : index
    %12 = vector.load %arg4[%c0_7, %c0_8] : memref<128x128xbf16, #tpu.memory_space<vmem>>, vector<128x128xbf16>
    %c0_9 = arith.constant 0 : index
    %c0_10 = arith.constant 0 : index
    %13 = vector.load %arg5[%c0_9, %c0_10] : memref<1x128xf32, #tpu.memory_space<vmem>>, vector<1x128xf32>
    %14 = arith.truncf %11 : vector<4x128xf32> to vector<4x128xbf16>
    %cst_11 = arith.constant dense<0.000000e+00> : vector<4x128xf32>
    %15 = tpu.matmul %14, %12, %cst_11 {dimension_numbers = #tpu.dot_dimension_numbers<[1], [0], [0], [1], [0, 0, 1, 1], [], []>} : vector<4x128xbf16>, vector<128x128xbf16>, vector<4x128xf32> -> vector<4x128xf32>
    %16 = vector.broadcast %13 : vector<1x128xf32> to vector<4x128xf32>
    %17 = arith.addf %15, %16 : vector<4x128xf32>
    %cst_12 = arith.constant 0.000000e+00 : f32
    %18 = vector.broadcast %cst_12 : f32 to vector<4x128xf32>
    %19 = arith.cmpf ogt, %17, %18 : vector<4x128xf32>
    %cst_13 = arith.constant 2.000000e-01 : f32
    %20 = vector.broadcast %cst_13 : f32 to vector<4x128xf32>
    %21 = arith.mulf %20, %17 : vector<4x128xf32>
    %22 = arith.select %19, %17, %21 : vector<4x128xi1>, vector<4x128xf32>
    %c0_14 = arith.constant 0 : index
    %c0_15 = arith.constant 0 : index
    %23 = vector.load %arg6[%c0_14, %c0_15] : memref<1x128xbf16, #tpu.memory_space<vmem>>, vector<1x128xbf16>
    %24 = arith.truncf %22 : vector<4x128xf32> to vector<4x128xbf16>
    %cst_16 = arith.constant dense<0.000000e+00> : vector<1x4xf32>
    %25 = tpu.matmul %23, %24, %cst_16 {dimension_numbers = #tpu.dot_dimension_numbers<[1], [1], [0], [0], [0, 0, 1, 0], [], []>} : vector<1x128xbf16>, vector<4x128xbf16>, vector<1x4xf32> -> vector<1x4xf32>
    %c0_17 = arith.constant 0 : index
    %c0_18 = arith.constant 0 : index
    %26 = vector.load %arg7[%c0_17, %c0_18] : memref<1x1xf32, #tpu.memory_space<vmem>>, vector<1x1xf32>
    %27 = vector.broadcast %26 : vector<1x1xf32> to vector<1x4xf32>
    %28 = arith.addf %25, %27 : vector<1x4xf32>
    %c0_19 = arith.constant 0 : index
    %c0_20 = arith.constant 0 : index
    %29 = vector.load %arg8[%c0_19, %c0_20] : memref<1x4xf32, #tpu.memory_space<vmem>>, vector<1x4xf32>
    tpu.vector_store %arg8[%c0_19, %c0_20], %28 {strides = array<i32>} : memref<1x4xf32, #tpu.memory_space<vmem>>, vector<1x4xf32>,
    return
  }
  func.func @transform_0(%arg0: i32) -> (i32, i32) {
    %c0_i32 = arith.constant 0 : i32
    %c0_i32_0 = arith.constant 0 : i32
    return %arg0, %c0_i32 : i32, i32
  }
  func.func @transform_1(%arg0: i32) -> (i32, i32) {
    %c0_i32 = arith.constant 0 : i32
    %c0_i32_0 = arith.constant 0 : i32
    %c0_i32_1 = arith.constant 0 : i32
    return %c0_i32, %c0_i32_0 : i32, i32
  }
  func.func @transform_2(%arg0: i32) -> (i32, i32) {
    %c0_i32 = arith.constant 0 : i32
    %c0_i32_0 = arith.constant 0 : i32
    %c0_i32_1 = arith.constant 0 : i32
    return %c0_i32, %c0_i32_0 : i32, i32
  }
  func.func @transform_3(%arg0: i32) -> (i32, i32) {
    %c0_i32 = arith.constant 0 : i32
    %c0_i32_0 = arith.constant 0 : i32
    %c0_i32_1 = arith.constant 0 : i32
    return %c0_i32, %c0_i32_0 : i32, i32
  }
  func.func @transform_4(%arg0: i32) -> (i32, i32) {
    %c0_i32 = arith.constant 0 : i32
    %c0_i32_0 = arith.constant 0 : i32
    %c0_i32_1 = arith.constant 0 : i32
    return %c0_i32, %c0_i32_0 : i32, i32
  }
  func.func @transform_5(%arg0: i32) -> (i32, i32) {
    %c0_i32 = arith.constant 0 : i32
    %c0_i32_0 = arith.constant 0 : i32
    %c0_i32_1 = arith.constant 0 : i32
    return %c0_i32, %c0_i32_0 : i32, i32
  }
  func.func @transform_6(%arg0: i32) -> (i32, i32) {
    %c0_i32 = arith.constant 0 : i32
    %c0_i32_0 = arith.constant 0 : i32
    %c0_i32_1 = arith.constant 0 : i32
    return %c0_i32, %c0_i32_0 : i32, i32
  }
  func.func @transform_7(%arg0: i32) -> (i32, i32) {
    %c0_i32 = arith.constant 0 : i32
    %c0_i32_0 = arith.constant 0 : i32
    return %c0_i32, %arg0 : i32, i32
  }
}

</mosaic_0001>

<bundles_post_ra>
// kernel: tpu_custom_call.1
= control target key start
LH: loop header
LB: loop body
LE: loop exit
PB: predicated region body
PF: predicated region fallthrough
CT: control target
= control target key end

     0   :  { %s569_s0 = inlined_call_operand.hbm [shape: f32[4,32], index: 0, kind: input, shape index: {}]   ;;  %s570_s1 = inlined_call_operand.hbm [shape: bf16[32,128], index: 1, kind: input, shape index: {}]   ;;  %s571_s2 = inlined_call_operand.vmem [shape: f32[1,128], index: 2, kind: input, shape index: {}]   ;;  %s572_s3 = inlined_call_operand.hbm [shape: bf16[128,128], index: 3, kind: input, shape index: {}]   ;;  %s573_s4 = inlined_call_operand.vmem [shape: f32[1,128], index: 4, kind: input, shape index: {}]   ;;  %s574_s5 = inlined_call_operand.vmem [shape: bf16[1,128], index: 5, kind: input, shape index: {}]   ;;  %s575_s6 = inlined_call_operand.<no memory space> [shape: f32[1,1], index: 6, kind: input, shape index: {}]   ;;  %s576_s7 = inlined_call_operand.hbm [shape: f32[1,4], index: 7, kind: output, shape index: {}]  }
   0x1   :  { %v12_v0 = vstv %s575_s6 }
   0x2   :  { %13 = vst [vmem:[#allocation2] sm:$0x1] %v12_v0 }
   0x3   :  { %14 = vsyncpa [#allocation4], 0 }
   0x4   :  { %15 = vsyncpa [#allocation7], 0 }
   0x5   :  { %16 = vsyncpa [#allocation5], 0  ;;  %s493_s26 = smov [#allocation6]  }
   0x6   :  { %s32_s27 = sshll.u32 %s493_s26, 4  ;;  %s33_s27 = int_to_ptr.vmem [resolvable:$true] %s32_s27 }
   0x7   :  { %s415_s28 = scalar_lea.vmem %s33_s27, 256  ;;  %p420_p1 = scmp.lt.s32.totalorder %s33_s27, %s33_s27 }
   0x8   :  { %p416_p0 = scmp.ne.s32.totalorder %s33_s27, %s415_s28  ;;  %p421_p2 = scmp.lt.s32.totalorder %s415_s28, %s415_s28 }
   0xa   :  { %p422_p3 = por %p421_p2, %p420_p1 }
   0xc   :  { %p423_p4 = pnand %p422_p3, %p416_p0 }
   0xe   :  { %426 = shalt.err (!%p423_p4)
}
   0xf   :  { %s494_s29 = smov 64   ;;  %s495_s30 = smov 4  }
  0x10   :  { %38 = dma.hbm_to_vmem [thread:$0]  %s570_s1, 256, %s33_s27, [#allocation7], %s494_s29, %s494_s29, %s495_s30  }
  0x11   :  { %s496_s6 = smov [#allocation3]   ;;  %s497_s11 = smov [#allocation8]  }
  0x12   :  { %s23_s10 = sshll.u32 %s496_s6, 4  ;;  %s46_s12 = sshll.u32 %s497_s11, 4  ;;  %s24_s10 = int_to_ptr.vmem [resolvable:$true] %s23_s10  ;;  %s47_s12 = int_to_ptr.vmem [resolvable:$true] %s46_s12 }
  0x13   :  { %s435_s13 = scalar_lea.vmem %s24_s10, 64  ;;  %p440_p6 = scmp.lt.s32.totalorder %s24_s10, %s24_s10 }
  0x14   :  { %p436_p5 = scmp.ne.s32.totalorder %s24_s10, %s435_s13  ;;  %p441_p7 = scmp.lt.s32.totalorder %s435_s13, %s435_s13 }
  0x16   :  { %p442_p8 = por %p441_p7, %p440_p6 }
  0x18   :  { %p443_p9 = pnand %p442_p8, %p436_p5 }
  0x1a   :  { %446 = shalt.err (!%p443_p9)
}
  0x1b   :  { %26 = dma.hbm_to_vmem [thread:$0]  %s569_s0, 64, %s24_s10, [#allocation4]  }
  0x1c   :  { %s455_s16 = scalar_lea.vmem %s47_s12, 1024  ;;  %p460_p11 = scmp.lt.s32.totalorder %s47_s12, %s47_s12 }
  0x1d   :  { %p456_p10 = scmp.ne.s32.totalorder %s47_s12, %s455_s16  ;;  %p461_p12 = scmp.lt.s32.totalorder %s455_s16, %s455_s16 }
  0x1f   :  { %p462_p13 = por %p461_p12, %p460_p11 }
  0x21   :  { %p463_p0 = pnand %p462_p13, %p456_p10 }
  0x23   :  { %466 = shalt.err (!%p463_p0)
}
  0x24   :  { %52 = dma.hbm_to_vmem [thread:$0]  %s572_s3, 1024, %s47_s12, [#allocation7], %s494_s29, %s494_s29, %s495_s30  }
  0x25   :  { %487 = dma.done.wait [#allocation4], 64  }
  0x26   :  { %488 = vsyncadd [#allocation4], 4294967232 }
  0x27   :  { %489 = dma.done.wait [#allocation7], 1280  }
  0x28   :  { %490 = vsyncadd [#allocation7], 4294966016  ;;  %v498_v1 = vmov 0.0   ;;  %vm499_vm0 = vmmov 0   ;;  %v397_v2 = vld [vmem:[#allocation6 + $0x8] sm:$0xff]   ;;  %v398_v3 = vld [vmem:[#allocation6] sm:$0xff]   ;;  %v264_v35 = vlaneseq }
  0x29   :  { %353 = vmatprep.subr.bf16.mxu0 %v498_v1  ;;  %357 = vmatprep.mubr.msk.bf16.mxu0 %vm499_vm0, %v498_v1  ;;  %v69_v4 = vld [vmem:[#allocation3] sm:$0xf]  ;;  %v399_v5 = vld [vmem:[#allocation8 + $0x38] sm:$0xff]   ;;  %v400_v7 = vld [vmem:[#allocation8 + $0x30] sm:$0xff]   ;;  %vm94_vm1 = vcmask 261120   ;;  %v500_v24 = vmov 0  }
  0x2a   :  { %361 = vmatprep.subr.bf16.mxu1 %v498_v1  ;;  %377 = vmatprep.mubr.msk.bf16.mxu1 %vm499_vm0, %v498_v1  ;;  %v75_v6 = vpack.c.bf16 %v69_v4, %v69_v4  ;;  %v401_v8 = vld [vmem:[#allocation8 + $0x28] sm:$0xff]   ;;  %v402_v9 = vld [vmem:[#allocation8 + $0x20] sm:$0xff]   ;;  %v403_v10 = vld [vmem:[#allocation8 + $0x18] sm:$0xff]   ;;  %v265_v36 = vshrl.u32 %v264_v35, 7  ;;  %vm308_vm4 = vcmask 24576  }
  0x2b   :  { %354 = vmatpush3.bf16.msra.mxu0 %v397_v2  ;;  %362 = vmatpush3.bf16.msra.mxu1 %v399_v5  ;;  %v404_v11 = vld [vmem:[#allocation8 + $0x10] sm:$0xff]   ;;  %v405_v12 = vld [vmem:[#allocation8 + $0x8] sm:$0xff]   ;;  %v406_v13 = vld [vmem:[#allocation8] sm:$0xff]  }
  0x2c   :  { %355 = vmatprep.subr.bf16.mxu0 %v498_v1  ;;  %363 = vmatprep.subr.bf16.mxu1 %v498_v1  ;;  %v326_v14 = vld [vmem:[%s571_s2] ss:$0 sm:$0xff]  ;;  %v266_v37 = vsub.s32 0, %v265_v36 }
  0x2d   :  { %v258_v23 = vld [vmem:[#allocation2] sm:$0x1]  ;;  %396 = vset.pattern.permute.xlu0 %v500_v24 }
  0x2e   :  { %261 = vperm.xlu0 %396, %v258_v23   ;;  %v330_v25 = vld [vmem:[%s573_s4] ss:$0 sm:$0xff]  ;;  %s501_s4 = smov [#allocation9]  }
  0x2f   :  { %356 = vmatpush3.bf16.msra.mxu0 %v398_v3  ;;  %364 = vmatpush3.bf16.msra.mxu1 %v400_v7  ;;  %v256_v34 = vld [vmem:[%s574_s5] sm:$0x1]  ;;  %s316_s21 = sshll.u32 %s501_s4, 4  ;;  %s317_s21 = int_to_ptr.vmem [resolvable:$true] %s316_s21 }
  0x30   :  { %381 = vmatprep.subr.bf16.mxu0 %v498_v1  ;;  %365 = vmatprep.subr.bf16.mxu1 %v498_v1  ;;  %s467_s22 = scalar_lea.vmem %s317_s21, 16  ;;  %s471_s23 = scalar_lea.vmem %s317_s21, 32 }
  0x31   :  { %p468_p1 = scmp.ne.s32.totalorder %s317_s21, %s467_s22  ;;  %p472_p2 = scmp.lt.s32.totalorder %s317_s21, %s317_s21 }
  0x32   :  { %358 = vmatmul.mubr.msk.bf16.vlgmr.msra.gmra.mxu0 %vm94_vm1, %v75_v6  ;;  %p473_p3 = scmp.lt.s32.totalorder %s471_s23, %s467_s22 }
  0x33   :  { %383 = vmatprep.mubr.msk.bf16.mxu0 %vm499_vm0, %v498_v1  ;;  %366 = vmatpush3.bf16.msra.mxu1 %v401_v8 }
  0x34   :  { %367 = vmatprep.subr.bf16.mxu1 %v498_v1  ;;  %p474_p4 = por %p473_p3, %p472_p2 }
  0x36   :  { %p475_p5 = pnand %p474_p4, %p468_p1 }
  0x37   :  { %368 = vmatpush3.bf16.msra.mxu1 %v402_v9 }
  0x38   :  { %369 = vmatprep.subr.bf16.mxu1 %v498_v1 }
  0x3b   :  { %370 = vmatpush3.bf16.msra.mxu1 %v403_v10 }
  0x3c   :  { %371 = vmatprep.subr.bf16.mxu1 %v498_v1 }
  0x3f   :  { %372 = vmatpush3.bf16.msra.mxu1 %v404_v11 }
  0x40   :  { %373 = vmatprep.subr.bf16.mxu1 %v498_v1 }
  0x43   :  { %374 = vmatpush3.bf16.msra.mxu1 %v405_v12 }
  0x44   :  { %375 = vmatprep.subr.bf16.mxu1 %v498_v1 }
  0x47   :  { %376 = vmatpush3.bf16.msra.mxu1 %v406_v13 }
  0xa9   :  { %v262_v38 = vpop.permute.xlu0 %261 }
  0xaa   :  { %v267_v39 = vrot.slane %v262_v38, %v266_v37 }
  0xf2   :  { %v132_v15 = vpop.f32.mrf.mxu0 }
  0xf3   :  { %v133_v16 = vadd.f32 %v326_v14, %v132_v15 }
  0xf4   :  { %v359_v17 = vpop.f32.mrf.mxu0 }
  0xf5   :  { %vm138_vm2 = vcmp.gt.f32.partialorder %v133_v16, 0.0  ;;  %v139_v18 = vmul.f32 0.2, %v133_v16 }
  0xf6   :  { %v135_v19 = vpop.f32.mrf.mxu0 }
  0xf7   :  { %v140_v20 = vsel %vm138_vm2, %v133_v16, %v139_v18 }
  0xf8   :  { %v360_v21 = vpop.f32.mrf.mxu0  ;;  %v158_v22 = vpack.c.bf16 %v140_v20, %v140_v20 }
  0xfa   :  { %378 = vmatmul.mubr.bf16.vlgmr.msra.gmra.mxu1 %v158_v22 }
 0x1ba   :  { %v247_v26 = vpop.f32.mrf.mxu1 }
 0x1bb   :  { %v248_v27 = vadd.f32 %v330_v25, %v247_v26 }
 0x1bc   :  { %v379_v28 = vpop.f32.mrf.mxu1 }
 0x1bd   :  { %vm253_vm3 = vcmp.gt.f32.partialorder %v248_v27, 0.0  ;;  %v254_v29 = vmul.f32 0.2, %v248_v27 }
 0x1be   :  { %v250_v30 = vpop.f32.mrf.mxu1 }
 0x1bf   :  { %v255_v31 = vsel %vm253_vm3, %v248_v27, %v254_v29 }
 0x1c0   :  { %v257_v32 = vpack.c.bf16 %v255_v31, %v255_v31  ;;  %v380_v33 = vpop.f32.mrf.mxu1 }
 0x1c2   :  { %382 = vmatpush3.bf16.xpose.msra.mxu0 %v257_v32 }
 0x1c9   :  { %384 = vmatmul.mubr.bf16.vlgmr.msra.gmra.mxu0 %v256_v34 }
 0x289   :  { %v302_v40 = vpop.f32.mrf.mxu0 }
 0x28a   :  { %v303_v41 = vadd.f32 %v302_v40, %v267_v39 }
 0x28b   :  { %v385_v42 = vpop.f32.mrf.mxu0 }
 0x28c   :  { %309 = vst.msk [vmem:[#allocation9] sm:$0x1] %vm308_vm4, %v303_v41 }
 0x28d   :  { %v305_v43 = vpop.f32.mrf.mxu0 }
 0x28e   :  { %478 = shalt.err (!%p475_p5)
}
 0x28f   :  { %319 = dma.vmem_to_hbm [thread:$0]  %s317_s21, 16, %s576_s7, [#allocation5]   ;;  %v386_v44 = vpop.f32.mrf.mxu0 }
 0x290   :  { %491 = dma.done.wait [#allocation5], 16  }
 0x291   :  { %492 = vsyncadd [#allocation5], 4294967280 }
 0x292   :  { %323 = vsyncpa [#allocation4], 1 }
 0x293   :  { %324 = vsyncpa [#allocation7], 1 }
 0x294   :  { %325 = vsyncpa [#allocation5], 1 }

</bundles_post_ra>
